<compile_context>
chip_gen: v5e
topology: v5e:2x2
jax: 0.10.0
libtpu: 0.0.40
codegen_flags: <defaults>
</compile_context>

<pallas_src>
import jax
import jax.numpy as jnp
from jax.experimental import pallas as pl
from jax.experimental.pallas import tpu as pltpu

_LANE = 128  # lane width — batch tiles are multiples of this


def _round_up(n, m):
    return ((n + m - 1) // m) * m


def critic_kernel(xt_ref, w1t_ref, b1_ref, w2_ref, b2_ref, o_ref):
    # Layer 1 on the MXU: (hidden, in_dim) @ (in_dim, tile_b) -> (hidden, tile_b).
    # bf16 operands, f32 accumulation. Batch lives on the wide N/lane axis.
    h = jnp.dot(w1t_ref[...], xt_ref[...], preferred_element_type=jnp.float32)
    h = h + b1_ref[...]                      # (hidden, 1) broadcast across lanes
    # LeakyReLU, PyTorch default negative_slope = 0.01 (f32 on the VPU).
    h = jnp.where(h > 0.0, h, 0.01 * h)
    # Layer 2 (hidden -> 1) as a weighted cross-sublane reduce on VPU/XLU (both have
    # slack) instead of an N=1 MXU matmul; accumulation and bias stay f32.
    out = jnp.sum(h * w2_ref[...], axis=0, keepdims=True) + b2_ref[...]
    o_ref[...] = out.astype(o_ref.dtype)     # lane-dense (1, tile_b) store


def custom_critic_forward(x, action, params, *, tile_b=2048,
                          vmem_limit_bytes=32 * 1024 * 1024):
    """x: (B, obs_dim) f32, action: (B, act_dim) f32 -> (B, 1) f32."""
    w1, b1, w2, b2 = params
    B, obs_dim = x.shape
    act_dim = action.shape[1]
    in_dim = obs_dim + act_dim
    hidden = w1.shape[1]

    # --- batch tiling: multiples of 128 lanes; ensure >=2 tiles when possible so the
    # "parallel" grid axis can shard across v7x's two TensorCores. -----------------
    b_pad_min = _round_up(B, _LANE)
    tile_b = _round_up(max(int(tile_b), _LANE), _LANE)
    tile_b = min(tile_b, b_pad_min)
    if b_pad_min >= 2 * _LANE:
        tile_b = min(tile_b, _round_up(pl.cdiv(b_pad_min, 2), _LANE))
    b_pad = _round_up(B, tile_b)
    grid = (b_pad // tile_b,)

    # --- single fused activation pass: concat + bf16 cast + transpose (+ pad) ------
    # Replaces the previous 4 wrapper HBM passes (2 casts + 2 pads). Emits
    # Xᵀ = (in_dim, b_pad) bf16 with batch contiguous on the minor (lane) dim.
    xt = jnp.concatenate([x, action], axis=1).astype(jnp.bfloat16).T  # (in_dim, B)
    if b_pad != B:
        xt = jnp.pad(xt, ((0, 0), (0, b_pad - B)))

    # --- weight prep (tiny, one-off): kernel-friendly shapes -----------------------
    w1t_bf = w1.T.astype(jnp.bfloat16)                    # (hidden, in_dim) bf16
    b1_col = b1.reshape(hidden, 1).astype(jnp.float32)    # (hidden, 1)
    w2_col = w2.reshape(hidden, 1).astype(jnp.float32)    # (hidden, 1)
    b2_sc = b2.reshape(1, 1).astype(jnp.float32)          # (1, 1)

    flops = 2 * b_pad * in_dim * hidden + 2 * b_pad * hidden
    bytes_accessed = (
        b_pad * in_dim * 2        # bf16 Xᵀ
        + b_pad * 4               # f32 (1, b_pad) output
        + hidden * in_dim * 2     # bf16 W1ᵀ
        + hidden * 4 + hidden * 4 + 4   # f32 b1, w2, b2
    )

    out_t = pl.pallas_call(
        critic_kernel,
        out_shape=jax.ShapeDtypeStruct((1, b_pad), jnp.float32),
        grid=grid,
        in_specs=[
            # Batch-tiled activations (pipelined / double-buffered across the grid).
            pl.BlockSpec((in_dim, tile_b), lambda i: (0, i)),
            # Weights / biases: constant index_map -> DMA'd once, VMEM-resident.
            pl.BlockSpec(w1t_bf.shape, lambda i: (0, 0)),
            pl.BlockSpec(b1_col.shape, lambda i: (0, 0)),
            pl.BlockSpec(w2_col.shape, lambda i: (0, 0)),
            pl.BlockSpec(b2_sc.shape, lambda i: (0, 0)),
        ],
        out_specs=pl.BlockSpec((1, tile_b), lambda i: (0, i)),
        compiler_params=pltpu.CompilerParams(
            dimension_semantics=("parallel",),   # batch-parallel -> 2-TC sharding on v7x
            vmem_limit_bytes=vmem_limit_bytes,   # far below all gens' scoped limits
        ),
        cost_estimate=pl.CostEstimate(
            flops=flops, transcendentals=0, bytes_accessed=bytes_accessed
        ),
    )(xt, w1t_bf, b1_col, w2_col, b2_sc)

    # (1, b_pad) lane-dense result -> (B, 1); the slice/reshape is a few KiB of copy.
    return out_t[0, :B].reshape(B, 1)


def init_params(key, obs_dim, act_dim, hidden=64):
    """Deterministic init mimicking nn.Linear's uniform(-1/sqrt(fan_in), 1/sqrt(fan_in))."""
    in_dim = obs_dim + act_dim
    k1, k2, k3, k4 = jax.random.split(key, 4)
    bound1 = 1.0 / jnp.sqrt(in_dim)
    bound2 = 1.0 / jnp.sqrt(hidden)
    w1 = jax.random.uniform(k1, (in_dim, hidden), jnp.float32, -bound1, bound1)
    b1 = jax.random.uniform(k2, (hidden,), jnp.float32, -bound1, bound1)
    w2 = jax.random.uniform(k3, (hidden, 1), jnp.float32, -bound2, bound2)
    b2 = jax.random.uniform(k4, (1,), jnp.float32, -bound2, bound2)
    return (w1, b1, w2, b2)


def reference_forward_f32(x, action, params):
    """Plain-JAX f32 reference identical to the PyTorch module semantics."""
    w1, b1, w2, b2 = params
    h = jnp.concatenate([x, action], axis=1) @ w1 + b1
    h = jnp.where(h > 0, h, 0.01 * h)
    return h @ w2 + b2.reshape(1, 1)


def reference_forward_matched(x, action, params):
    """Reference using the same bf16 layer-1 operands as the kernel (tight check)."""
    w1, b1, w2, b2 = params
    xa = jnp.concatenate([x, action], axis=1).astype(jnp.bfloat16)
    h = jnp.dot(xa, w1.astype(jnp.bfloat16),
                preferred_element_type=jnp.float32) + b1
    h = jnp.where(h > 0, h, 0.01 * h)
    return jnp.dot(h, w2, preferred_element_type=jnp.float32) + b2.reshape(1, 1)


if __name__ == "__main__":
    OBS_DIM, ACT_DIM = 24, 8
    key = jax.random.PRNGKey(0)
    kx, ka, kp, kx2, ka2 = jax.random.split(key, 5)
    params = init_params(kp, OBS_DIM, ACT_DIM)

    # --- small case (B=8): single 128-lane tile, exercises the padding path --------
    B = 8
    x = jax.random.normal(kx, (B, OBS_DIM), jnp.float32)
    action = jax.random.normal(ka, (B, ACT_DIM), jnp.float32)

    out = jax.block_until_ready(custom_critic_forward(x, action, params))
    assert out.shape == (B, 1)

    ref_m = reference_forward_matched(x, action, params)
    ref_f = reference_forward_f32(x, action, params)
    assert jnp.allclose(out, ref_m, atol=1e-4, rtol=1e-4), (out, ref_m)
    assert jnp.allclose(out, ref_f, atol=5e-2, rtol=5e-2), (out, ref_f)

    # --- larger case (B not a multiple of the tile): exercises the batch grid ------
    B2 = 600
    x2 = jax.random.normal(kx2, (B2, OBS_DIM), jnp.float32)
    action2 = jax.random.normal(ka2, (B2, ACT_DIM), jnp.float32)

    out2 = jax.block_until_ready(
        custom_critic_forward(x2, action2, params, tile_b=256))
    assert out2.shape == (B2, 1)

    ref2_m = reference_forward_matched(x2, action2, params)
    ref2_f = reference_forward_f32(x2, action2, params)
    assert jnp.allclose(out2, ref2_m, atol=1e-4, rtol=1e-4)
    assert jnp.allclose(out2, ref2_f, atol=5e-2, rtol=5e-2)

    print("KERNEL_OK")
</pallas_src>

<mosaic_0001>
module attributes {stable_mosaic.version = 11 : i64} {
  func.func @critic_kernel(%arg0: i32, %arg1: memref<32x128xbf16, #tpu.memory_space<vmem>>, %arg2: memref<64x32xbf16, #tpu.memory_space<vmem>>, %arg3: memref<64x1xf32, #tpu.memory_space<vmem>>, %arg4: memref<64x1xf32, #tpu.memory_space<vmem>>, %arg5: memref<1x1xf32, #tpu.memory_space<vmem>>, %arg6: memref<1x128xf32, #tpu.memory_space<vmem>>) attributes {dimension_semantics = [#tpu.dimension_semantics<parallel>], iteration_bounds = array<i64: 1>, scalar_prefetch = 0 : i64, scratch_operands = 0 : i64, tpu.core_type = #tpu.core_type<tc>, window_params = [{transform_indices = @transform_0, window_bounds = array<i64: 32, 128>}, {pipeline_mode = #tpu.pipeline_mode<synchronous>, transform_indices = @transform_1, window_bounds = array<i64: 64, 32>}, {pipeline_mode = #tpu.pipeline_mode<synchronous>, transform_indices = @transform_2, window_bounds = array<i64: 64, 1>}, {pipeline_mode = #tpu.pipeline_mode<synchronous>, transform_indices = @transform_3, window_bounds = array<i64: 64, 1>}, {pipeline_mode = #tpu.pipeline_mode<synchronous>, transform_indices = @transform_4, window_bounds = array<i64: 1, 1>}, {transform_indices = @transform_5, window_bounds = array<i64: 1, 128>}]} {
    %c0 = arith.constant 0 : index
    %c0_0 = arith.constant 0 : index
    %0 = vector.load %arg2[%c0, %c0_0] : memref<64x32xbf16, #tpu.memory_space<vmem>>, vector<64x32xbf16>
    %c0_1 = arith.constant 0 : index
    %c0_2 = arith.constant 0 : index
    %1 = vector.load %arg1[%c0_1, %c0_2] : memref<32x128xbf16, #tpu.memory_space<vmem>>, vector<32x128xbf16>
    %cst = arith.constant dense<0.000000e+00> : vector<64x128xf32>
    %2 = tpu.matmul %0, %1, %cst {dimension_numbers = #tpu.dot_dimension_numbers<[1], [0], [0], [1], [0, 0, 1, 1], [], []>} : vector<64x32xbf16>, vector<32x128xbf16>, vector<64x128xf32> -> vector<64x128xf32>
    %c0_3 = arith.constant 0 : index
    %c0_4 = arith.constant 0 : index
    %3 = vector.load %arg3[%c0_3, %c0_4] : memref<64x1xf32, #tpu.memory_space<vmem>>, vector<64x1xf32>
    %4 = vector.broadcast %3 : vector<64x1xf32> to vector<64x128xf32>
    %5 = arith.addf %2, %4 : vector<64x128xf32>
    %cst_5 = arith.constant 0.000000e+00 : f32
    %6 = vector.broadcast %cst_5 : f32 to vector<64x128xf32>
    %7 = arith.cmpf ogt, %5, %6 : vector<64x128xf32>
    %cst_6 = arith.constant 0.00999999977 : f32
    %8 = vector.broadcast %cst_6 : f32 to vector<64x128xf32>
    %9 = arith.mulf %8, %5 : vector<64x128xf32>
    %10 = arith.select %7, %5, %9 : vector<64x128xi1>, vector<64x128xf32>
    %c0_7 = arith.constant 0 : index
    %c0_8 = arith.constant 0 : index
    %11 = vector.load %arg4[%c0_7, %c0_8] : memref<64x1xf32, #tpu.memory_space<vmem>>, vector<64x1xf32>
    %12 = vector.broadcast %11 : vector<64x1xf32> to vector<64x128xf32>
    %13 = arith.mulf %10, %12 : vector<64x128xf32>
    %cst_9 = arith.constant dense<0.000000e+00> : vector<128xf32>
    %14 = vector.multi_reduction <add>, %13, %cst_9 [0] : vector<64x128xf32> to vector<128xf32>
    %15 = vector.shape_cast %14 : vector<128xf32> to vector<1x128xf32>
    %c0_10 = arith.constant 0 : index
    %c0_11 = arith.constant 0 : index
    %16 = vector.load %arg5[%c0_10, %c0_11] : memref<1x1xf32, #tpu.memory_space<vmem>>, vector<1x1xf32>
    %17 = vector.broadcast %16 : vector<1x1xf32> to vector<1x128xf32>
    %18 = arith.addf %15, %17 : vector<1x128xf32>
    %c0_12 = arith.constant 0 : index
    %c0_13 = arith.constant 0 : index
    %19 = vector.load %arg6[%c0_12, %c0_13] : memref<1x128xf32, #tpu.memory_space<vmem>>, vector<1x128xf32>
    tpu.vector_store %arg6[%c0_12, %c0_13], %18 {strides = array<i32>} : memref<1x128xf32, #tpu.memory_space<vmem>>, vector<1x128xf32>,
    return
  }
  func.func @transform_0(%arg0: i32) -> (i32, i32) {
    %c0_i32 = arith.constant 0 : i32
    %c0_i32_0 = arith.constant 0 : i32
    return %c0_i32, %arg0 : i32, i32
  }
  func.func @transform_1(%arg0: i32) -> (i32, i32) {
    %c0_i32 = arith.constant 0 : i32
    %c0_i32_0 = arith.constant 0 : i32
    %c0_i32_1 = arith.constant 0 : i32
    return %c0_i32, %c0_i32_0 : i32, i32
  }
  func.func @transform_2(%arg0: i32) -> (i32, i32) {
    %c0_i32 = arith.constant 0 : i32
    %c0_i32_0 = arith.constant 0 : i32
    %c0_i32_1 = arith.constant 0 : i32
    return %c0_i32, %c0_i32_0 : i32, i32
  }
  func.func @transform_3(%arg0: i32) -> (i32, i32) {
    %c0_i32 = arith.constant 0 : i32
    %c0_i32_0 = arith.constant 0 : i32
    %c0_i32_1 = arith.constant 0 : i32
    return %c0_i32, %c0_i32_0 : i32, i32
  }
  func.func @transform_4(%arg0: i32) -> (i32, i32) {
    %c0_i32 = arith.constant 0 : i32
    %c0_i32_0 = arith.constant 0 : i32
    %c0_i32_1 = arith.constant 0 : i32
    return %c0_i32, %c0_i32_0 : i32, i32
  }
  func.func @transform_5(%arg0: i32) -> (i32, i32) {
    %c0_i32 = arith.constant 0 : i32
    %c0_i32_0 = arith.constant 0 : i32
    return %c0_i32, %arg0 : i32, i32
  }
}

</mosaic_0001>

<bundles_post_ra>
// kernel: tpu_custom_call.1
= control target key start
LH: loop header
LB: loop body
LE: loop exit
PB: predicated region body
PF: predicated region fallthrough
CT: control target
= control target key end

     0   :  { %s451_s0 = inlined_call_operand.vmem [shape: bf16[32,128], index: 0, kind: input, shape index: {}]   ;;  %s452_s1 = inlined_call_operand.vmem [shape: bf16[64,32], index: 1, kind: input, shape index: {}]   ;;  %s453_s2 = inlined_call_operand.vmem [shape: f32[64,1], index: 2, kind: input, shape index: {}]   ;;  %s454_s3 = inlined_call_operand.vmem [shape: f32[64,1], index: 3, kind: input, shape index: {}]   ;;  %s455_s4 = inlined_call_operand.<no memory space> [shape: f32[1,1], index: 4, kind: input, shape index: {}]   ;;  %s456_s5 = inlined_call_operand.hbm [shape: f32[1,128], index: 5, kind: output, shape index: {}]  }
   0x1   :  { %v10_v0 = vstv %s455_s4 }
   0x2   :  { %11 = vst [vmem:[#allocation2] sm:$0x1] %v10_v0 }
   0x3   :  { %v38_v1 = vld [vmem:[%s453_s2 + $0x10] sm:$0xff]  ;;  %v36_v2 = vld [vmem:[%s453_s2] sm:$0xff]  ;;  %v309_v3 = vld [vmem:[%s451_s0 + $0x8] sm:$0xff]  ;;  %v347_v4 = vmov 0  }
   0x4   :  { %319 = vset.pattern.permute.xlu1 %v347_v4  ;;  %318 = vset.pattern.permute.xlu0 %v347_v4  ;;  %v40_v5 = vld [vmem:[%s453_s2 + $0x20] sm:$0xff]  ;;  %v39_v7 = vld [vmem:[%s453_s2 + $0x18] sm:$0xff]  ;;  %v37_v8 = vld [vmem:[%s453_s2 + $0x8] sm:$0xff] }
   0x5   :  { %56 = vperm.xlu1 %319, %v38_v1   ;;  %46 = vperm.xlu0 %318, %v36_v2   ;;  %v308_v6 = vld [vmem:[%s451_s0] sm:$0xff]  ;;  %v305_v10 = vld [vmem:[%s452_s1 + $0x8] sm:$0xff] }
   0x6   :  { %320 = vset.pattern.permute.xlu2 %v347_v4  ;;  %135 = vmatpush.bf16.msra.mxu0 %v309_v3  ;;  %v304_v9 = vld [vmem:[%s452_s1] sm:$0xff] }
   0x7   :  { %310 = vmatpush.bf16.msra.mxu1 %v309_v3  ;;  %311 = vmatpush.bf16.msra.mxu2 %v309_v3 }
   0x8   :  { %312 = vmatpush.bf16.msra.mxu3 %v309_v3  ;;  %66 = vperm.xlu2 %320, %v40_v5  }
   0xa   :  { %136 = vmatpush.bf16.msra.mxu0 %v308_v6 }
   0xb   :  { %12 = vsyncpa [#allocation4], 0  ;;  %313 = vmatpush.bf16.msra.mxu1 %v308_v6  ;;  %314 = vmatpush.bf16.msra.mxu2 %v308_v6  ;;  %vm116_vm0 = vcmask 261120   ;;  %v306_v11 = vld [vmem:[%s452_s1 + $0x10] sm:$0xff]  ;;  %v307_v12 = vld [vmem:[%s452_s1 + $0x18] sm:$0xff]  ;;  %s267_s0 = sshll.u32 %s456_s5, 4  ;;  %s268_s0 = int_to_ptr.hbm [resolvable:$true] %s267_s0 }
   0xc   :  { %315 = vmatpush.bf16.msra.mxu3 %v308_v6  ;;  %v41_v13 = vld [vmem:[%s453_s2 + $0x28] sm:$0xff]  ;;  %v182_v15 = vld [vmem:[%s454_s3] sm:$0xff]  ;;  %v184_v16 = vld [vmem:[%s454_s3 + $0x10] sm:$0xff] }
   0xd   :  { %61 = vperm.xlu1 %319, %v39_v7   ;;  %51 = vperm.xlu0 %318, %v37_v8   ;;  %v183_v14 = vld [vmem:[%s454_s3 + $0x8] sm:$0xff]  ;;  %v42_v17 = vld [vmem:[%s453_s2 + $0x30] sm:$0xff]  ;;  %v185_v18 = vld [vmem:[%s454_s3 + $0x18] sm:$0xff] }
   0xe   :  { %300 = vmatmul.msk.bf16.vlgmr.msra.gmra.mxu0 %vm116_vm0, %v304_v9  ;;  %301 = vmatmul.msk.bf16.vlgmr.msra.gmra.mxu1 %vm116_vm0, %v305_v10  ;;  %v186_v19 = vld [vmem:[%s454_s3 + $0x20] sm:$0xff]  ;;  %v187_v20 = vld [vmem:[%s454_s3 + $0x28] sm:$0xff]  ;;  %v43_v21 = vld [vmem:[%s453_s2 + $0x38] sm:$0xff]  ;;  %s348_s2 = smov [#allocation3]  }
   0xf   :  { %302 = vmatmul.msk.bf16.vlgmr.msra.gmra.mxu2 %vm116_vm0, %v306_v11  ;;  %303 = vmatmul.msk.bf16.vlgmr.msra.gmra.mxu3 %vm116_vm0, %v307_v12  ;;  %v188_v22 = vld [vmem:[%s454_s3 + $0x30] sm:$0xff]  ;;  %v251_v23 = vld [vmem:[#allocation2] sm:$0x1]  ;;  %v189_v24 = vld [vmem:[%s454_s3 + $0x38] sm:$0xff]  ;;  %s265_s3 = sshll.u32 %s348_s2, 4  ;;  %s266_s3 = int_to_ptr.vmem [resolvable:$true] %s265_s3 }
  0x10   :  { %71 = vperm.xlu2 %320, %v41_v13  }
  0x15   :  { %197 = vperm.xlu1 %319, %v183_v14   ;;  %192 = vperm.xlu0 %318, %v182_v15  }
  0x18   :  { %202 = vperm.xlu2 %320, %v184_v16  }
  0x1d   :  { %76 = vperm.xlu1 %319, %v42_v17   ;;  %207 = vperm.xlu0 %318, %v185_v18  }
  0x20   :  { %212 = vperm.xlu2 %320, %v186_v19  }
  0x25   :  { %217 = vperm.xlu1 %319, %v187_v20   ;;  %81 = vperm.xlu0 %318, %v43_v21  }
  0x28   :  { %222 = vperm.xlu2 %320, %v188_v22  }
  0x2d   :  { %254 = vperm.xlu1 %319, %v251_v23   ;;  %227 = vperm.xlu0 %318, %v189_v24  }
  0x62   :  { %v67_v27 = vpop.permute.xlu2 %66 }
  0x6a   :  { %v72_v30 = vpop.permute.xlu2 %71 }
  0x72   :  { %v203_v35 = vpop.permute.xlu2 %202 }
  0x77   :  { %v57_v25 = vpop.permute.xlu1 %56  ;;  %v47_v26 = vpop.permute.xlu0 %46 }
  0x7a   :  { %v213_v52 = vpop.permute.xlu2 %212 }
  0x7f   :  { %v52_v28 = vpop.permute.xlu0 %51  ;;  %v62_v29 = vpop.permute.xlu1 %61 }
  0x82   :  { %v223_v16 = vpop.permute.xlu2 %222 }
  0x87   :  { %v193_v31 = vpop.permute.xlu0 %192  ;;  %v198_v32 = vpop.permute.xlu1 %197 }
  0x8b   :  { %v138_v33 = vpop.f32.mrf.mxu0  ;;  %v143_v34 = vpop.f32.mrf.mxu1 }
  0x8c   :  { %v139_v36 = vadd.f32 %v138_v33, %v47_v26  ;;  %v144_v38 = vadd.f32 %v143_v34, %v57_v25 }
  0x8e   :  { %v166_v39 = vmul.f32 0.01, %v139_v36  ;;  %vm158_vm1 = vcmp.gt.f32.partialorder %v139_v36, 0.0  ;;  %v168_v44 = vmul.f32 0.01, %v144_v38  ;;  %vm160_vm2 = vcmp.gt.f32.partialorder %v144_v38, 0.0 }
  0x8f   :  { %v208_v37 = vpop.permute.xlu0 %207  ;;  %v77_v48 = vpop.permute.xlu1 %76 }
  0x90   :  { %v174_v49 = vsel %vm158_vm1, %v139_v36, %v166_v39  ;;  %v176_v53 = vsel %vm160_vm2, %v144_v38, %v168_v44 }
  0x91   :  { %v230_v58 = vmul.f32 %v193_v31, %v174_v49  ;;  %v232_v63 = vmul.f32 %v203_v35, %v176_v53 }
  0x92   :  { %v148_v40 = vpop.f32.mrf.mxu2  ;;  %v153_v41 = vpop.f32.mrf.mxu3 }
  0x93   :  { %v140_v42 = vpop.f32.mrf.mxu0  ;;  %v145_v43 = vpop.f32.mrf.mxu1  ;;  %v149_v45 = vadd.f32 %v148_v40, %v67_v27  ;;  %v154_v55 = vadd.f32 %v153_v41, %v77_v48 }
  0x94   :  { %v141_v46 = vadd.f32 %v140_v42, %v52_v28  ;;  %v146_v47 = vadd.f32 %v145_v43, %v62_v29 }
  0x95   :  { %v170_v54 = vmul.f32 0.01, %v149_v45  ;;  %vm162_vm5 = vcmp.gt.f32.partialorder %v149_v45, 0.0  ;;  %vm164_vm6 = vcmp.gt.f32.partialorder %v154_v55, 0.0  ;;  %v172_v3 = vmul.f32 0.01, %v154_v55 }
  0x96   :  { %vm159_vm3 = vcmp.gt.f32.partialorder %v141_v46, 0.0  ;;  %v167_v50 = vmul.f32 0.01, %v141_v46  ;;  %v169_v51 = vmul.f32 0.01, %v146_v47  ;;  %vm161_vm4 = vcmp.gt.f32.partialorder %v146_v47, 0.0 }
  0x97   :  { %v82_v57 = vpop.permute.xlu0 %81  ;;  %v178_v2 = vsel %vm162_vm5, %v149_v45, %v170_v54  ;;  %v180_v11 = vsel %vm164_vm6, %v154_v55, %v172_v3  ;;  %v218_v12 = vpop.permute.xlu1 %217 }
  0x98   :  { %v175_v56 = vsel %vm159_vm3, %v141_v46, %v167_v50  ;;  %v177_v60 = vsel %vm161_vm4, %v146_v47, %v169_v51  ;;  %v234_v8 = vmul.f32 %v213_v52, %v178_v2  ;;  %v236_v18 = vmul.f32 %v223_v16, %v180_v11 }
  0x99   :  { %v231_v59 = vmul.f32 %v198_v32, %v175_v56  ;;  %v233_v5 = vmul.f32 %v208_v37, %v177_v60 }
  0x9a   :  { %v150_v61 = vpop.f32.mrf.mxu2  ;;  %v155_v62 = vpop.f32.mrf.mxu3 }
  0x9b   :  { %v238_v0 = vadd.f32 %v231_v59, %v230_v58  ;;  %v151_v1 = vadd.f32 %v150_v61, %v72_v30  ;;  %v156_v4 = vadd.f32 %v155_v62, %v82_v57 }
  0x9d   :  { %v239_v6 = vadd.f32 %v238_v0, %v232_v63  ;;  %vm163_vm7 = vcmp.gt.f32.partialorder %v151_v1, 0.0  ;;  %v171_v7 = vmul.f32 0.01, %v151_v1  ;;  %v173_v13 = vmul.f32 0.01, %v156_v4 }
  0x9e   :  { %vm165_vm8 = vcmp.gt.f32.partialorder %v156_v4, 0.0 }
  0x9f   :  { %v240_v9 = vadd.f32 %v239_v6, %v233_v5  ;;  %v179_v10 = vsel %vm163_vm7, %v151_v1, %v171_v7  ;;  %v228_v17 = vpop.permute.xlu0 %227  ;;  %v181_v20 = vsel %vm165_vm8, %v156_v4, %v173_v13  ;;  %v255_v28 = vpop.permute.xlu1 %254 }
  0xa0   :  { %v235_v14 = vmul.f32 %v218_v12, %v179_v10  ;;  %v237_v21 = vmul.f32 %v228_v17, %v181_v20  ;;  %v257_v30 = vperm.slane %v255_v28, 0 }
  0xa1   :  { %v241_v15 = vadd.f32 %v240_v9, %v234_v8 }
  0xa3   :  { %v242_v19 = vadd.f32 %v241_v15, %v235_v14 }
  0xa5   :  { %v243_v22 = vadd.f32 %v242_v19, %v236_v18 }
  0xa7   :  { %v244_v23 = vadd.f32 %v243_v22, %v237_v21 }
  0xa9   :  { %v245_v24 = vrot.slane %v244_v23, 4 }
  0xab   :  { %v246_v25 = vadd.f32 %v245_v24, %v244_v23 }
  0xad   :  { %v247_v26 = vrot.slane %v246_v25, 2 }
  0xaf   :  { %v248_v27 = vadd.f32 %v247_v26, %v246_v25 }
  0xb1   :  { %v249_v29 = vrot.slane %v248_v27, 1 }
  0xb3   :  { %v250_v31 = vadd.f32 %v249_v29, %v248_v27 }
  0xb5   :  { %v258_v32 = vadd.f32 %v257_v30, %v250_v31 }
  0xb7   :  { %259 = vst [vmem:[#allocation3] sm:$0x1] %v258_v32 }
  0xb8   :  { %270 = dma.vmem_to_hbm [thread:$0]  %s266_s3, 16, %s268_s0, [#allocation4]  }
  0xb9   :  { %345 = dma.done.wait [#allocation4], 16  }
  0xba   :  { %346 = vsyncadd [#allocation4], 4294967280 }
  0xbb   :  { %275 = vsyncpa [#allocation4], 1 }

</bundles_post_ra>
